<compile_context>
chip_gen: v6e
topology: v6e:2x2x1
jax: 0.10.0
libtpu: 0.0.40
codegen_flags: <defaults>
</compile_context>

<pallas_src>
import jax
import jax.numpy as jnp
from jax.experimental import pallas as pl
from jax.experimental.pallas import tpu as pltpu

_GROUP = 8        # samples packed per reshaped row (free contiguous reshape)


def _logreg_kernel(x_ref, w_ref, b_ref, o_ref):
    # x_ref: (TR, GROUP*F) VMEM tile -- 8 samples per row, ~lane-dense.
    # w_ref: (GROUP*F, GROUP) block-diagonal weight matrix, resident in VMEM.
    # b_ref: (1,) f32 bias in SMEM.
    # o_ref: (TR, GROUP) sigmoid(per-sample logits).
    z = jnp.dot(x_ref[...], w_ref[...], preferred_element_type=jnp.float32)
    z = z + b_ref[0]
    # sigmoid(z) = 0.5 * (tanh(z/2) + 1): one EUP op, exact.
    o_ref[...] = 0.5 * (jnp.tanh(0.5 * z) + 1.0)


def _xla_logistic_regression(x, w, b):
    # w: (1, F) PyTorch nn.Linear layout, b: (1,)
    return jax.nn.sigmoid(x @ w.T + b)


def _round_up(n, m):
    return ((n + m - 1) // m) * m


def logistic_regression(x, w, b, *, block_rows=8192, min_pallas_batch=2048,
                        force_pallas=False):
    """x: (B, 15) f32, w: (1, 15) f32 (nn.Linear layout), b: (1,) f32 -> (B, 1)."""
    B, num_features = x.shape
    w_flat = w.reshape(-1).astype(jnp.float32)          # (F,)
    b_flat = b.reshape(-1).astype(jnp.float32)          # (1,)
    assert w_flat.shape[0] == num_features

    if (not force_pallas and B < min_pallas_batch) or B < _GROUP:
        # Tiny problem: per-step overhead dwarfs the work; XLA is optimal.
        return _xla_logistic_regression(x, w, b)

    # Main body: largest prefix whose length is a multiple of _GROUP; the
    # <=7 leftover rows (rare) are handled by XLA and concatenated (tiny).
    b_main = (B // _GROUP) * _GROUP
    r = b_main // _GROUP
    x_main = x if b_main == B else x[:b_main]
    # Free, contiguous regroup: row i holds samples 8i .. 8i+7.
    x_r = x_main.reshape(r, _GROUP * num_features)       # (R, 120)

    # Block-diagonal selection matrix: W_sel[g*F + f, g] = w[f].
    w_sel = jnp.kron(jnp.eye(_GROUP, dtype=jnp.float32),
                     w_flat.reshape(num_features, 1))     # (120, 8)

    # Tile rows: big enough to amortize the ~0.35us per-step overhead, small
    # enough to double-buffer in VMEM (2*(in+out) = 2048*TR bytes), and keep
    # >= ~8 grid steps when possible so v7x shards across its 2 TensorCores.
    target_steps = 8
    desired = _round_up(min(block_rows, pl.cdiv(r, target_steps)), 8)
    tr = r if desired >= r else desired
    grid = (pl.cdiv(r, tr),)

    out_r = pl.pallas_call(
        _logreg_kernel,
        out_shape=jax.ShapeDtypeStruct((r, _GROUP), jnp.float32),
        grid_spec=pltpu.PrefetchScalarGridSpec(
            num_scalar_prefetch=0,
            grid=grid,
            in_specs=[
                pl.BlockSpec((tr, _GROUP * num_features), lambda i: (i, 0)),
                pl.BlockSpec((_GROUP * num_features, _GROUP), lambda i: (0, 0)),
                pl.BlockSpec(memory_space=pltpu.MemorySpace.SMEM),
            ],
            out_specs=pl.BlockSpec((tr, _GROUP), lambda i: (i, 0)),
        ),
        compiler_params=pltpu.CompilerParams(
            dimension_semantics=("parallel",),     # independent tiles
            vmem_limit_bytes=32 * 1024 * 1024,     # room for TR=8192 everywhere
        ),
    )(x_r, w_sel, b_flat)

    out = out_r.reshape(b_main, 1)                # free contiguous reshape
    if b_main != B:
        tail = _xla_logistic_regression(x[b_main:], w, b)
        out = jnp.concatenate([out, tail], axis=0)
    return out


if __name__ == "__main__":
    key = jax.random.PRNGKey(0)
    k_x, k_w, k_b = jax.random.split(key, 3)

    B, F_IN = 1024, 15
    x = jax.random.normal(k_x, (B, F_IN), dtype=jnp.float32)

    # Deterministic nn.Linear-style init: U(-1/sqrt(F), 1/sqrt(F)),
    # weight in PyTorch (out_features, in_features) layout.
    bound = 1.0 / jnp.sqrt(jnp.float32(F_IN))
    w = jax.random.uniform(k_w, (1, F_IN), minval=-bound, maxval=bound,
                           dtype=jnp.float32)
    b = jax.random.uniform(k_b, (1,), minval=-bound, maxval=bound,
                           dtype=jnp.float32)

    # force_pallas so the small-batch XLA fallback does not kick in; with
    # B=1024 the tile logic picks TR=16 -> an 8-step pipelined grid.
    out = logistic_regression(x, w, b, force_pallas=True)
    jax.block_until_ready(out)

    # Pure-JAX reference check.
    ref = jax.nn.sigmoid(x @ w.T + b)
    assert out.shape == (B, 1)
    assert jnp.allclose(out, ref, atol=2e-3, rtol=0.0), \
        float(jnp.max(jnp.abs(out - ref)))

    print("KERNEL_OK")
</pallas_src>

<mosaic_0001>
module attributes {stable_mosaic.version = 11 : i64} {
  func.func @_logreg_kernel(%arg0: i32, %arg1: memref<16x120xf32, #tpu.memory_space<vmem>>, %arg2: memref<120x8xf32, #tpu.memory_space<vmem>>, %arg3: memref<1xf32, #tpu.memory_space<smem>>, %arg4: memref<16x8xf32, #tpu.memory_space<vmem>>) attributes {dimension_semantics = [#tpu.dimension_semantics<parallel>], iteration_bounds = array<i64: 8>, scalar_prefetch = 0 : i64, scratch_operands = 0 : i64, tpu.core_type = #tpu.core_type<tc>, window_params = [{transform_indices = @transform_0, window_bounds = array<i64: 16, 120>}, {pipeline_mode = #tpu.pipeline_mode<synchronous>, transform_indices = @transform_1, window_bounds = array<i64: 120, 8>}, {transform_indices = @transform_2, window_bounds = array<i64: 1>}, {transform_indices = @transform_3, window_bounds = array<i64: 16, 8>}]} {
    %c0 = arith.constant 0 : index
    %c0_0 = arith.constant 0 : index
    %0 = vector.load %arg1[%c0, %c0_0] : memref<16x120xf32, #tpu.memory_space<vmem>>, vector<16x120xf32>
    %c0_1 = arith.constant 0 : index
    %c0_2 = arith.constant 0 : index
    %1 = vector.load %arg2[%c0_1, %c0_2] : memref<120x8xf32, #tpu.memory_space<vmem>>, vector<120x8xf32>
    %cst = arith.constant dense<0.000000e+00> : vector<16x8xf32>
    %2 = tpu.matmul %0, %1, %cst {dimension_numbers = #tpu.dot_dimension_numbers<[1], [0], [0], [1], [0, 0, 1, 1], [], []>} : vector<16x120xf32>, vector<120x8xf32>, vector<16x8xf32> -> vector<16x8xf32>
    %c0_3 = arith.constant 0 : index
    %3 = memref.load %arg3[%c0_3] : memref<1xf32, #tpu.memory_space<smem>>
    %4 = vector.broadcast %3 : f32 to vector<16x8xf32>
    %5 = arith.addf %2, %4 : vector<16x8xf32>
    %cst_4 = arith.constant 5.000000e-01 : f32
    %6 = vector.broadcast %cst_4 : f32 to vector<16x8xf32>
    %7 = arith.mulf %6, %5 : vector<16x8xf32>
    %8 = math.tanh %7 : vector<16x8xf32>
    %cst_5 = arith.constant 1.000000e+00 : f32
    %9 = vector.broadcast %cst_5 : f32 to vector<16x8xf32>
    %10 = arith.addf %8, %9 : vector<16x8xf32>
    %cst_6 = arith.constant 5.000000e-01 : f32
    %11 = vector.broadcast %cst_6 : f32 to vector<16x8xf32>
    %12 = arith.mulf %11, %10 : vector<16x8xf32>
    %c0_7 = arith.constant 0 : index
    %c0_8 = arith.constant 0 : index
    %13 = vector.load %arg4[%c0_7, %c0_8] : memref<16x8xf32, #tpu.memory_space<vmem>>, vector<16x8xf32>
    tpu.vector_store %arg4[%c0_7, %c0_8], %12 {strides = array<i32>} : memref<16x8xf32, #tpu.memory_space<vmem>>, vector<16x8xf32>,
    return
  }
  func.func @transform_0(%arg0: i32) -> (i32, i32) {
    %c0_i32 = arith.constant 0 : i32
    %c0_i32_0 = arith.constant 0 : i32
    return %arg0, %c0_i32 : i32, i32
  }
  func.func @transform_1(%arg0: i32) -> (i32, i32) {
    %c0_i32 = arith.constant 0 : i32
    %c0_i32_0 = arith.constant 0 : i32
    %c0_i32_1 = arith.constant 0 : i32
    return %c0_i32, %c0_i32_0 : i32, i32
  }
  func.func @transform_2(%arg0: i32) -> i32 {
    %c0_i32 = arith.constant 0 : i32
    %c0_i32_0 = arith.constant 0 : i32
    return %c0_i32 : i32
  }
  func.func @transform_3(%arg0: i32) -> (i32, i32) {
    %c0_i32 = arith.constant 0 : i32
    %c0_i32_0 = arith.constant 0 : i32
    return %arg0, %c0_i32 : i32, i32
  }
}

</mosaic_0001>

<bundles_post_ra>
// kernel: tpu_custom_call.1
= control target key start
LH: loop header
LB: loop body
LE: loop exit
PB: predicated region body
PF: predicated region fallthrough
CT: control target
= control target key end

     0   :  { %s449_s14 = smov 0   ;;  %s524_s0 = inlined_call_operand.vmem [shape: f32[128,120], index: 0, kind: input, shape index: {}]   ;;  %s525_s1 = inlined_call_operand.vmem [shape: f32[120,8], index: 1, kind: input, shape index: {}]   ;;  %s526_s2 = inlined_call_operand.<no memory space> [shape: f32[1], index: 2, kind: input, shape index: {}]   ;;  %s527_s3 = inlined_call_operand.vmem [shape: f32[128,8], index: 3, kind: output, shape index: {}]  }
   0x1   :  { %8 = sst [smem:[#allocation2]] %s526_s2 }
   0x2 LB: > { %s343_s15 = sadd.s32 4294967295, %s424_s14   ;;  %p347_p0 = scmp.ge.s32.totalorder %s424_s14, 1  ;;  %s424_s14 = sphi %s449_s14, %s14_s14  }
   0x3   : > { %p139_p1 = scmp.lt.s32.totalorder %s424_s14, 9 }
   0x5   : > { %p140_p2 = pnand %p347_p0, %p139_p1 }
   0x6   : > { %s348_s19 = sshll.u32 (!%p140_p2), %s343_s15, 1  ;;  %s192_s25 = sld [smem:[#allocation2]] (!%p140_p2) }
   0x7   : > { %143 = sbr.rel (%p140_p2) target bundleno = 261 (0x105), region = 32  ;;  %p164_p3 = scmp.lt.s32.totalorder (!%p140_p2), %s348_s19, 15 }
   0xc   : > { %v191_v0 = vld [vmem:[%s525_s1 + $0x70] sm:$0xff]  ;;  %v190_v1 = vld [vmem:[%s525_s1 + $0x68] sm:$0xff]  ;;  %v189_v2 = vld [vmem:[%s525_s1 + $0x60] sm:$0xff]  ;;  %s529_s19 = smov (!%p164_p3, %s348_s19), 15  ;;  %vm194_vm0 = vcmask 982016   ;;  %v193_v17 = vstv %s192_s25  ;;  %vm284_vm1 = vcmask 64512  }
   0xd   : > { %373 = vmatprep.subr.mxu0 %v191_v0  ;;  %v188_v3 = vld [vmem:[%s525_s1 + $0x58] sm:$0xff]  ;;  %s349_s24 = sshll.u32 %s529_s19, 3  ;;  %v187_v4 = vld [vmem:[%s525_s1 + $0x50] sm:$0xff]  ;;  %v186_v6 = vld [vmem:[%s525_s1 + $0x48] sm:$0xff] }
   0xe   : > { %374 = vmatpush3.msra.mxu0 %v191_v0  ;;  %s480_s29 = scalar_lea.vmem %s524_s0, %s349_s24  ;;  %v185_v7 = vld [vmem:[%s525_s1 + $0x40] sm:$0xff]  ;;  %v184_v8 = vld [vmem:[%s525_s1 + $0x38] sm:$0xff]  ;;  %v183_v9 = vld [vmem:[%s525_s1 + $0x30] sm:$0xff]  ;;  %s173_s28 = scalar_lea.vmem %s527_s3, %s349_s24 }
   0xf   : > { %375 = vmatprep.subr.mxu0 %v190_v1  ;;  %v175_v5 = vld [vmem:[%s480_s29] sm:$0xff]  ;;  %v182_v10 = vld [vmem:[%s525_s1 + $0x28] sm:$0xff]  ;;  %v180_v12 = vld [vmem:[%s525_s1 + $0x18] sm:$0xff] }
  0x10   : > { %376 = vmatpush3.msra.mxu0 %v190_v1  ;;  %403 = vmatprep.mubr.msk.f32.mxu0 %vm194_vm0, %v175_v5  ;;  %v181_v11 = vld [vmem:[%s525_s1 + $0x20] sm:$0xff]  ;;  %v179_v13 = vld [vmem:[%s525_s1 + $0x10] sm:$0xff]  ;;  %v178_v14 = vld [vmem:[%s525_s1 + $0x8] sm:$0xff] }
  0x11   : > { %377 = vmatprep.subr.mxu0 %v189_v2  ;;  %v177_v15 = vld [vmem:[%s525_s1] sm:$0xff]  ;;  %v176_v16 = vld [vmem:[%s480_s29 + $0x8] sm:$0xff] }
  0x12   : > { %378 = vmatpush3.msra.mxu0 %v189_v2 }
  0x13   : > { %379 = vmatprep.subr.mxu0 %v188_v3 }
  0x14   : > { %380 = vmatpush3.msra.mxu0 %v188_v3 }
  0x15   : > { %381 = vmatprep.subr.mxu0 %v187_v4 }
  0x16   : > { %382 = vmatpush3.msra.mxu0 %v187_v4 }
  0x17   : > { %383 = vmatprep.subr.mxu0 %v186_v6 }
  0x18   : > { %384 = vmatpush3.msra.mxu0 %v186_v6 }
  0x19   : > { %385 = vmatprep.subr.mxu0 %v185_v7 }
  0x1a   : > { %386 = vmatpush3.msra.mxu0 %v185_v7 }
  0x1b   : > { %387 = vmatprep.subr.mxu0 %v184_v8 }
  0x1c   : > { %388 = vmatpush3.msra.mxu0 %v184_v8 }
  0x1d   : > { %389 = vmatprep.subr.mxu0 %v183_v9 }
  0x1e   : > { %390 = vmatpush3.msra.mxu0 %v183_v9 }
  0x1f   : > { %391 = vmatprep.subr.mxu0 %v182_v10 }
  0x20   : > { %392 = vmatpush3.msra.mxu0 %v182_v10 }
  0x21   : > { %393 = vmatprep.subr.mxu0 %v181_v11 }
  0x22   : > { %394 = vmatpush3.msra.mxu0 %v181_v11 }
  0x23   : > { %395 = vmatprep.subr.mxu0 %v180_v12 }
  0x24   : > { %396 = vmatpush3.msra.mxu0 %v180_v12 }
  0x25   : > { %397 = vmatprep.subr.mxu0 %v179_v13 }
  0x26   : > { %398 = vmatpush3.msra.mxu0 %v179_v13 }
  0x27   : > { %399 = vmatprep.subr.mxu0 %v178_v14 }
  0x28   : > { %400 = vmatpush3.msra.mxu0 %v178_v14 }
  0x29   : > { %401 = vmatprep.subr.mxu0 %v177_v15 }
  0x2a   : > { %402 = vmatpush3.msra.mxu0 %v177_v15 }
  0x2b   : > { %404 = vmatmul.mubr.msk.f32.vlgmr.msra.gmra.mxu0 %vm194_vm0, %v176_v16 }
  0xeb   : > { %v405_v18 = vpop.f32.mrf.mxu0 }
  0xec   : > { %v273_v19 = vadd.f32 %v405_v18, %v193_v17 }
  0xed   : > { %v267_v20 = vpop.f32.mrf.mxu0 }
  0xee   : > { %v277_v21 = vmul.f32 0.5, %v273_v19  ;;  %v268_v22 = vadd.f32 %v267_v20, %v193_v17 }
  0xf0   : > { %414 = vtanh.f32 %v277_v21  ;;  %v276_v23 = vmul.f32 0.5, %v268_v22 }
  0xf2   : > { %416 = vtanh.f32 %v276_v23 }
  0xfd   : > { %v415_v24 = vpop.eup %414 }
  0xfe   : > { %v281_v25 = vadd.f32 1.0, %v415_v24 }
  0xff   : > { %v417_v26 = vpop.eup %416 }
 0x100   : > { %v283_v27 = vmul.f32 0.5, %v281_v25  ;;  %v280_v28 = vadd.f32 1.0, %v417_v26 }
 0x102   : > { %286 = vst.msk [vmem:[%s173_s28 + $0x8] sm:$0xff] %vm284_vm1, %v283_v27  ;;  %v282_v29 = vmul.f32 0.5, %v280_v28 }
 0x104   : > { %285 = vst.msk [vmem:[%s173_s28] sm:$0xff] %vm284_vm1, %v282_v29 }
 0x105 PF: > { %s14_s14 = sadd.s32 1, %s424_s14  }
 0x106   : > { %p11_p4 = scmp.ge.s32.totalorder %s14_s14, 10  }
 0x108   :  { %13 = sbr.rel (!%p11_p4) target bundleno = 2 (0x2), region = 62 }

</bundles_post_ra>
